<compile_context>
chip_gen: v7x
topology: tpu7x:2x2x1
jax: 0.10.0
libtpu: 0.0.40
codegen_flags: <defaults>
</compile_context>

<pallas_src>
import jax
import jax.numpy as jnp
from jax.experimental import pallas as pl
from jax.experimental.pallas import tpu as pltpu


# ----------------------------------------------------------------------------
# generation-aware VMEM budget / tile selection
# ----------------------------------------------------------------------------
def _vmem_limit_bytes():
    # ~3/4 of physical VMEM, capped at 96 MiB (v5e/v6e: 128 MiB phys -> 96 MiB,
    # v7x: 64 MiB phys -> 48 MiB).  Falls back to the conservative v7x number.
    try:
        phys = pltpu.get_tpu_info().vmem_capacity_bytes
    except Exception:
        phys = 64 * 1024 * 1024
    return min(int(phys * 3 // 4), 96 * 1024 * 1024)


def _pick_tile(n, candidates):
    for c in candidates:
        if c <= n and n % c == 0:
            return c
    return n


def _default_tiles(B, V, H, K, budget):
    """Pick (tb, tv) so kernel 1's per-step VMEM fits the scoped budget."""
    tb = _pick_tile(B, (512, 256, 128, 64, 32, 16, 8))
    resident = (B * H * 4 + B * (K + 1) * 4                 # acc + theta/kl
                + 2 * (H * H + 3 * H + 2 * H * K + 2 * K) * 4)  # small weights
    for tv in (4096, 2048, 1024, 512, 256, 128):
        if tv > V or V % tv != 0:
            continue
        streams = (2 * tb * tv * 4      # bows tile, f32, double-buffered
                   + 2 * tv * H * 2     # w1 tile, bf16, double-buffered
                   + tv * H * 4)        # in-kernel f32 upcast temp
        if resident + streams <= int(budget * 0.8):
            return tb, tv
    return tb, _pick_tile(V, (128,))


# ----------------------------------------------------------------------------
# kernel 1: encoder  ->  theta (nb, tb, K), per-example KL (nb, tb, 1)
# ----------------------------------------------------------------------------
def _encoder_kernel(bows_ref, w1_ref, b1_ref, w2_ref, b2_ref, wh_ref, bh_ref,
                    theta_ref, kl_ref, acc_ref, rsum_ref):
    v = pl.program_id(0)          # vocab tile (outer): w1 tile fetched ONCE
    i = pl.program_id(1)          # batch tile (inner)

    @pl.when((v == 0) & (i == 0))
    def _init():
        acc_ref[...] = jnp.zeros_like(acc_ref)
        rsum_ref[...] = jnp.zeros_like(rsum_ref)

    bows = bows_ref[...]                                    # f32, exact counts
    # w1 arrives from HBM as bf16 (halves the dominant V*H stream); upcast in
    # VMEM and accumulate in f32.
    acc_ref[i] = acc_ref[i] + jnp.dot(
        bows, w1_ref[...].astype(jnp.float32),
        preferred_element_type=jnp.float32)
    rsum_ref[i] = rsum_ref[i] + jnp.sum(bows, axis=-1, keepdims=True)

    @pl.when(v == pl.num_programs(0) - 1)
    def _finalize():
        num_topics = theta_ref.shape[-1]
        # (bows @ w1) / rowsum  ==  normalized_bows @ w1
        inv_rows = 1.0 / jnp.maximum(rsum_ref[i], 1.0)
        h1 = jnp.tanh(acc_ref[i] * inv_rows + b1_ref[...])
        h2 = jnp.tanh(jnp.dot(h1, w2_ref[...], preferred_element_type=jnp.float32)
                      + b2_ref[...])
        # fused mu | logsigma head: one (H, 2K) matmul instead of two (H, K).
        heads = (jnp.dot(h2, wh_ref[...], preferred_element_type=jnp.float32)
                 + bh_ref[...])
        mu = heads[:, :num_topics]
        logsigma = heads[:, num_topics:]

        kl_ref[i] = -0.5 * jnp.sum(
            1.0 + logsigma - mu * mu - jnp.exp(logsigma), axis=-1, keepdims=True)

        # eval mode: z = mu; theta = softmax(z).  Exact divide at this
        # once-per-batch-tile site (negligible cost, tighter parity).
        z = mu - jnp.max(mu, axis=-1, keepdims=True)
        ez = jnp.exp(z)
        theta_ref[i] = ez / jnp.sum(ez, axis=-1, keepdims=True)


# ----------------------------------------------------------------------------
# kernel 2: logits (K, V) + online softmax stats (per vocab half)
# ----------------------------------------------------------------------------
def _beta_stats_kernel(alphas_ref, rho_ref, logits_ref, m_ref, l_ref):
    v = pl.program_id(1)          # vocab tile within this half

    @pl.when(v == 0)
    def _init():
        m_ref[...] = jnp.full_like(m_ref, -jnp.inf)
        l_ref[...] = jnp.zeros_like(l_ref)

    logit = jnp.dot(alphas_ref[...], rho_ref[...].astype(jnp.float32),
                    preferred_element_type=jnp.float32)               # (K, tv)
    logits_ref[...] = logit       # reused by kernel 3 (no second rho^T pass)

    m_prev = m_ref[...]
    m_new = jnp.maximum(m_prev, jnp.max(logit, axis=-1, keepdims=True))
    l_ref[...] = (l_ref[...] * jnp.exp(m_prev - m_new)
                  + jnp.sum(jnp.exp(logit - m_new), axis=-1, keepdims=True))
    m_ref[...] = m_new


# ----------------------------------------------------------------------------
# kernel 3: beta tile (K, V orientation) + decode + recon partial sums
# ----------------------------------------------------------------------------
def _decode_kernel(logits_ref, m_ref, l_ref, theta_ref, bows_ref,
                   beta_ref, recon_ref, acc_ref):
    v = pl.program_id(1)          # vocab tile within this half
    i = pl.program_id(2)          # batch tile (inner)

    @pl.when((v == 0) & (i == 0))
    def _init():
        acc_ref[...] = jnp.zeros_like(acc_ref)

    # Build this vocab tile of beta exactly once per (half, vocab) step.  Its
    # output block index depends ONLY on grid axes 0/1 (never on the inner
    # batch axis i), so the block stays VMEM-resident and is read by every
    # batch tile below.  Do NOT reorder this grid without revisiting that.
    @pl.when(i == 0)
    def _make_beta():
        beta_ref[...] = jnp.exp(logits_ref[...] - m_ref[...]) / l_ref[...]

    res = jnp.dot(theta_ref[...], beta_ref[...],
                  preferred_element_type=jnp.float32)                 # (tb, tv)
    preds = jnp.log(res + 1e-6)
    part = -jnp.sum(preds * bows_ref[...], axis=-1, keepdims=True)    # (tb, 1)
    acc_ref[i] = acc_ref[i] + part

    @pl.when((v == pl.num_programs(1) - 1) & (i == pl.num_programs(2) - 1))
    def _finalize():
        recon_ref[...] = acc_ref[...]


# ----------------------------------------------------------------------------
# wrapper
# ----------------------------------------------------------------------------
def etm_forward(bows, params, *, tb=None, tv=None):
    """ETM forward (eval semantics). Returns (recon_loss, kld_theta, theta, beta)."""
    B, V = bows.shape
    H = params["w1"].shape[1]
    K = params["wmu"].shape[1]
    R = params["rho"].shape[1]
    f32 = jnp.float32

    vmem_limit = _vmem_limit_bytes()
    if tb is None or tv is None:
        dtb, dtv = _default_tiles(B, V, H, K, vmem_limit)
        tb = dtb if tb is None else tb
        tv = dtv if tv is None else tv
    assert B % tb == 0 and V % tv == 0, "pad batch/vocab to tile multiples"
    assert (tb % 8 == 0 or tb == B) and (tv % 128 == 0 or tv == V)
    nb, nv = B // tb, V // tv

    # Leading "parallel" vocab-half axis for kernels 2/3: lets v7x shard the
    # work across its two TensorCores; harmless on single-TC v5e/v6e.
    vsplit = 2 if (nv % 2 == 0 and nv >= 2) else 1
    nvh = nv // vsplit

    # One-time packing + bf16 casts of the big streamed weights (kernels are
    # HBM-bound; all MXU accumulation stays f32).
    wh = jnp.concatenate([params["wmu"], params["wls"]], axis=1)       # (H, 2K)
    bh = jnp.concatenate([params["bmu"], params["bls"]], axis=1)       # (1, 2K)
    w1_bf16 = params["w1"].astype(jnp.bfloat16)                        # (V, H)
    rho_rv_bf16 = params["rho"].T.astype(jnp.bfloat16)                 # (R, V)
    alphas_kr = params["alphas"]                                       # (K, R)

    def cp(sem):
        return pltpu.CompilerParams(dimension_semantics=sem,
                                    vmem_limit_bytes=vmem_limit)

    # -------- kernel 1: encoder (vocab outer -> w1 streamed once) -----------
    theta3, kl3 = pl.pallas_call(
        _encoder_kernel,
        grid=(nv, nb),
        in_specs=[
            pl.BlockSpec((tb, tv), lambda v, i: (i, v)),     # bows tile (f32)
            pl.BlockSpec((tv, H), lambda v, i: (v, 0)),      # w1 tile (bf16)
            pl.BlockSpec((1, H), lambda v, i: (0, 0)),       # b1 (resident)
            pl.BlockSpec((H, H), lambda v, i: (0, 0)),       # w2 (resident)
            pl.BlockSpec((1, H), lambda v, i: (0, 0)),       # b2
            pl.BlockSpec((H, 2 * K), lambda v, i: (0, 0)),   # wmu|wls fused
            pl.BlockSpec((1, 2 * K), lambda v, i: (0, 0)),   # bmu|bls fused
        ],
        out_specs=(
            pl.BlockSpec((nb, tb, K), lambda v, i: (0, 0, 0)),  # theta (resident)
            pl.BlockSpec((nb, tb, 1), lambda v, i: (0, 0, 0)),  # per-example KL
        ),
        out_shape=(
            jax.ShapeDtypeStruct((nb, tb, K), f32),
            jax.ShapeDtypeStruct((nb, tb, 1), f32),
        ),
        scratch_shapes=[pltpu.VMEM((nb, tb, H), f32),
                        pltpu.VMEM((nb, tb, 1), f32)],
        compiler_params=cp(("arbitrary", "arbitrary")),
    )(bows, w1_bf16, params["b1"], params["w2"], params["b2"], wh, bh)
    theta = theta3.reshape(B, K)
    kl_per_ex = kl3.reshape(B)

    # -------- kernel 2: logits + per-half online softmax stats --------------
    logits, m_half, l_half = pl.pallas_call(
        _beta_stats_kernel,
        grid=(vsplit, nvh),
        in_specs=[
            pl.BlockSpec((K, R), lambda c, v: (0, 0)),               # alphas
            pl.BlockSpec((R, tv), lambda c, v: (0, c * nvh + v)),    # rho^T bf16
        ],
        out_specs=(
            pl.BlockSpec((K, tv), lambda c, v: (0, c * nvh + v)),    # logits
            pl.BlockSpec((K, 1), lambda c, v: (c, 0)),               # max
            pl.BlockSpec((K, 1), lambda c, v: (c, 0)),               # exp-sum
        ),
        out_shape=(
            jax.ShapeDtypeStruct((K, V), f32),
            jax.ShapeDtypeStruct((vsplit * K, 1), f32),
            jax.ShapeDtypeStruct((vsplit * K, 1), f32),
        ),
        compiler_params=cp(("parallel", "arbitrary")),
    )(alphas_kr, rho_rv_bf16)

    # Merge the per-half online-softmax stats (tiny log-sum-exp combine).
    m_p = m_half.reshape(vsplit, K, 1)
    l_p = l_half.reshape(vsplit, K, 1)
    beta_m = jnp.max(m_p, axis=0)                                    # (K, 1)
    beta_l = jnp.sum(l_p * jnp.exp(m_p - beta_m), axis=0)            # (K, 1)

    # -------- kernel 3: beta (K, V) + decode + recon -------------------------
    beta, recon_parts = pl.pallas_call(
        _decode_kernel,
        grid=(vsplit, nvh, nb),     # vocab outer: each logits tile read once
        in_specs=[
            pl.BlockSpec((K, tv), lambda c, v, i: (0, c * nvh + v)),  # logits
            pl.BlockSpec((K, 1), lambda c, v, i: (0, 0)),             # max
            pl.BlockSpec((K, 1), lambda c, v, i: (0, 0)),             # denom
            pl.BlockSpec((tb, K), lambda c, v, i: (i, 0)),            # theta
            pl.BlockSpec((tb, tv), lambda c, v, i: (i, c * nvh + v)), # bows
        ],
        out_specs=(
            pl.BlockSpec((K, tv), lambda c, v, i: (0, c * nvh + v)),  # beta
            pl.BlockSpec((nb, tb, 1), lambda c, v, i: (c, 0, 0)),     # recon part
        ),
        out_shape=(
            jax.ShapeDtypeStruct((K, V), f32),
            jax.ShapeDtypeStruct((vsplit * nb, tb, 1), f32),
        ),
        scratch_shapes=[pltpu.VMEM((nb, tb, 1), f32)],
        compiler_params=cp(("parallel", "arbitrary", "arbitrary")),
    )(logits, beta_m, beta_l, theta, bows)

    # Tiny final aggregations in the wrapper (no shared scalars across cores).
    recon_per_ex = recon_parts.reshape(vsplit, B).sum(axis=0)
    recon_loss = jnp.mean(recon_per_ex)
    kld_theta = jnp.mean(kl_per_ex)
    return recon_loss, kld_theta, theta, beta


def make_params(key, vocab_size, t_hidden_size, num_topics, rho_size):
    """Parameters in PyTorch layouts (Linear.weight transposed where noted)."""
    ks = jax.random.split(key, 8)
    s = 0.05
    return {
        # q_theta: Linear(V->H) stored as (V, H) = weight.T, tanh, Linear(H->H)
        "w1": s * jax.random.normal(ks[0], (vocab_size, t_hidden_size), jnp.float32),
        "b1": jnp.zeros((1, t_hidden_size), jnp.float32),
        "w2": s * jax.random.normal(ks[1], (t_hidden_size, t_hidden_size), jnp.float32),
        "b2": jnp.zeros((1, t_hidden_size), jnp.float32),
        # mu / logsigma heads: Linear(H->K) stored as (H, K) = weight.T
        "wmu": s * jax.random.normal(ks[2], (t_hidden_size, num_topics), jnp.float32),
        "bmu": s * jax.random.normal(ks[3], (1, num_topics), jnp.float32),
        "wls": s * jax.random.normal(ks[4], (t_hidden_size, num_topics), jnp.float32),
        "bls": s * jax.random.normal(ks[5], (1, num_topics), jnp.float32),
        # rho.weight (V, R), alphas.weight (K, R)  (PyTorch layouts)
        "rho": s * jax.random.normal(ks[6], (vocab_size, rho_size), jnp.float32),
        "alphas": s * jax.random.normal(ks[7], (num_topics, rho_size), jnp.float32),
    }


def etm_reference(bows, p):
    """Pure-JAX reference of the same (eval-mode) forward, for validation."""
    rowsum = jnp.maximum(jnp.sum(bows, axis=1, keepdims=True), 1.0)
    nbows = bows / rowsum
    h1 = jnp.tanh(nbows @ p["w1"] + p["b1"])
    h2 = jnp.tanh(h1 @ p["w2"] + p["b2"])
    mu = h2 @ p["wmu"] + p["bmu"]
    logsigma = h2 @ p["wls"] + p["bls"]
    kl = jnp.mean(-0.5 * jnp.sum(1 + logsigma - mu ** 2 - jnp.exp(logsigma), -1))
    theta = jax.nn.softmax(mu, axis=-1)
    beta = jax.nn.softmax(p["rho"] @ p["alphas"].T, axis=0).T          # (K, V)
    preds = jnp.log(theta @ beta + 1e-6)
    recon = jnp.mean(-jnp.sum(preds * bows, axis=1))
    return recon, kl, theta, beta


if __name__ == "__main__":
    # Small shapes chosen so every tiled code path is exercised:
    # tb=8, tv=128 -> 2 batch tiles x 4 vocab tiles (vsplit=2, 2 tiles/half).
    B, V, H, K, R = 16, 512, 128, 8, 64

    key = jax.random.PRNGKey(0)
    kp, kb = jax.random.split(key)
    params = make_params(kp, vocab_size=V, t_hidden_size=H,
                         num_topics=K, rho_size=R)

    # synthetic bag-of-words counts
    bows = jnp.floor(5.0 * jax.random.uniform(kb, (B, V), jnp.float32))

    recon, kl, theta, beta = etm_forward(bows, params, tb=8, tv=128)
    jax.block_until_ready((recon, kl, theta, beta))

    r_ref, k_ref, t_ref, b_ref = etm_reference(bows, params)

    # bf16 streaming of w1 / rho^T (f32 accumulation) costs a few e-4 relative
    # vs the pure-f32 reference -> compare at 5e-3 relative.
    assert jnp.allclose(recon, r_ref, rtol=5e-3, atol=1e-5), (recon, r_ref)
    assert jnp.allclose(kl, k_ref, rtol=1e-3, atol=1e-5), (kl, k_ref)
    assert jnp.allclose(theta, t_ref, rtol=5e-3, atol=1e-5)
    assert jnp.allclose(beta, b_ref, rtol=5e-3, atol=1e-6)

    print("KERNEL_OK")
</pallas_src>

<mosaic_0001>
module attributes {stable_mosaic.version = 11 : i64} {
  func.func @_encoder_kernel(%arg0: i32, %arg1: i32, %arg2: memref<8x128xf32, #tpu.memory_space<vmem>>, %arg3: memref<128x128xbf16, #tpu.memory_space<vmem>>, %arg4: memref<1x128xf32, #tpu.memory_space<vmem>>, %arg5: memref<128x128xf32, #tpu.memory_space<vmem>>, %arg6: memref<1x128xf32, #tpu.memory_space<vmem>>, %arg7: memref<128x16xf32, #tpu.memory_space<vmem>>, %arg8: memref<1x16xf32, #tpu.memory_space<vmem>>, %arg9: memref<2x8x8xf32, #tpu.memory_space<vmem>>, %arg10: memref<2x8x1xf32, #tpu.memory_space<vmem>>, %arg11: memref<2x8x128xf32, #tpu.memory_space<vmem>>, %arg12: memref<2x8x1xf32, #tpu.memory_space<vmem>>) attributes {dimension_semantics = [#tpu.dimension_semantics<arbitrary>, #tpu.dimension_semantics<arbitrary>], iteration_bounds = array<i64: 4, 2>, scalar_prefetch = 0 : i64, scratch_operands = 2 : i64, tpu.core_type = #tpu.core_type<tc>, window_params = [{transform_indices = @transform_0, window_bounds = array<i64: 8, 128>}, {transform_indices = @transform_1, window_bounds = array<i64: 128, 128>}, {pipeline_mode = #tpu.pipeline_mode<synchronous>, transform_indices = @transform_2, window_bounds = array<i64: 1, 128>}, {pipeline_mode = #tpu.pipeline_mode<synchronous>, transform_indices = @transform_3, window_bounds = array<i64: 128, 128>}, {pipeline_mode = #tpu.pipeline_mode<synchronous>, transform_indices = @transform_4, window_bounds = array<i64: 1, 128>}, {pipeline_mode = #tpu.pipeline_mode<synchronous>, transform_indices = @transform_5, window_bounds = array<i64: 128, 16>}, {pipeline_mode = #tpu.pipeline_mode<synchronous>, transform_indices = @transform_6, window_bounds = array<i64: 1, 16>}, {pipeline_mode = #tpu.pipeline_mode<synchronous>, transform_indices = @transform_7, window_bounds = array<i64: 2, 8, 8>}, {pipeline_mode = #tpu.pipeline_mode<synchronous>, transform_indices = @transform_8, window_bounds = array<i64: 2, 8, 1>}]} {
    %c0_i32 = arith.constant 0 : i32
    %0 = arith.cmpi eq, %arg0, %c0_i32 : i32
    %c0_i32_0 = arith.constant 0 : i32
    %1 = arith.cmpi eq, %arg1, %c0_i32_0 : i32
    %2 = arith.andi %0, %1 : i1
    %3 = arith.extui %2 : i1 to i32
    %c0_i32_1 = arith.constant 0 : i32
    %4 = arith.cmpi ne, %3, %c0_i32_1 : i32
    scf.if %4 {
      %cst_15 = arith.constant 0.000000e+00 : f32
      %30 = vector.broadcast %cst_15 : f32 to vector<2x8x128xf32>
      %c0_16 = arith.constant 0 : index
      %c0_17 = arith.constant 0 : index
      %c0_18 = arith.constant 0 : index
      %31 = vector.load %arg11[%c0_16, %c0_17, %c0_18] : memref<2x8x128xf32, #tpu.memory_space<vmem>>, vector<2x8x128xf32>
      tpu.vector_store %arg11[%c0_16, %c0_17, %c0_18], %30 {strides = array<i32>} : memref<2x8x128xf32, #tpu.memory_space<vmem>>, vector<2x8x128xf32>,
      %cst_19 = arith.constant 0.000000e+00 : f32
      %32 = vector.broadcast %cst_19 : f32 to vector<2x8x1xf32>
      %c0_20 = arith.constant 0 : index
      %c0_21 = arith.constant 0 : index
      %c0_22 = arith.constant 0 : index
      %33 = vector.load %arg12[%c0_20, %c0_21, %c0_22] : memref<2x8x1xf32, #tpu.memory_space<vmem>>, vector<2x8x1xf32>
      tpu.vector_store %arg12[%c0_20, %c0_21, %c0_22], %32 {strides = array<i32>} : memref<2x8x1xf32, #tpu.memory_space<vmem>>, vector<2x8x1xf32>,
    } else {
    }
    %c0 = arith.constant 0 : index
    %c0_2 = arith.constant 0 : index
    %5 = vector.load %arg2[%c0, %c0_2] : memref<8x128xf32, #tpu.memory_space<vmem>>, vector<8x128xf32>
    %6 = arith.index_cast %arg1 : i32 to index
    %c0_3 = arith.constant 0 : index
    %c0_4 = arith.constant 0 : index
    %7 = vector.load %arg11[%6, %c0_3, %c0_4] : memref<2x8x128xf32, #tpu.memory_space<vmem>>, vector<1x8x128xf32>
    %8 = vector.shape_cast %7 : vector<1x8x128xf32> to vector<8x128xf32>
    %c0_5 = arith.constant 0 : index
    %c0_6 = arith.constant 0 : index
    %9 = vector.load %arg3[%c0_5, %c0_6] : memref<128x128xbf16, #tpu.memory_space<vmem>>, vector<128x128xbf16>
    %10 = arith.extf %9 : vector<128x128xbf16> to vector<128x128xf32>
    %cst = arith.constant dense<0.000000e+00> : vector<8x128xf32>
    %11 = tpu.matmul %5, %10, %cst {dimension_numbers = #tpu.dot_dimension_numbers<[1], [0], [0], [1], [0, 0, 1, 1], [], []>} : vector<8x128xf32>, vector<128x128xf32>, vector<8x128xf32> -> vector<8x128xf32>
    %12 = arith.addf %8, %11 : vector<8x128xf32>
    %13 = arith.index_cast %arg1 : i32 to index
    %c0_7 = arith.constant 0 : index
    %c0_8 = arith.constant 0 : index
    %14 = vector.load %arg11[%13, %c0_7, %c0_8] : memref<2x8x128xf32, #tpu.memory_space<vmem>>, vector<1x8x128xf32>
    %15 = vector.shape_cast %14 : vector<1x8x128xf32> to vector<8x128xf32>
    %16 = vector.shape_cast %12 : vector<8x128xf32> to vector<1x8x128xf32>
    tpu.vector_store %arg11[%13, %c0_7, %c0_8], %16 {strides = array<i32>} : memref<2x8x128xf32, #tpu.memory_space<vmem>>, vector<1x8x128xf32>,
    %17 = arith.index_cast %arg1 : i32 to index
    %c0_9 = arith.constant 0 : index
    %c0_10 = arith.constant 0 : index
    %18 = vector.load %arg12[%17, %c0_9, %c0_10] : memref<2x8x1xf32, #tpu.memory_space<vmem>>, vector<1x8x1xf32>
    %19 = vector.shape_cast %18 : vector<1x8x1xf32> to vector<8x1xf32>
    %cst_11 = arith.constant dense<0.000000e+00> : vector<8xf32>
    %20 = vector.multi_reduction <add>, %5, %cst_11 [1] : vector<8x128xf32> to vector<8xf32>
    %21 = vector.shape_cast %20 : vector<8xf32> to vector<8x1xf32>
    %22 = arith.addf %19, %21 : vector<8x1xf32>
    %23 = arith.index_cast %arg1 : i32 to index
    %c0_12 = arith.constant 0 : index
    %c0_13 = arith.constant 0 : index
    %24 = vector.load %arg12[%23, %c0_12, %c0_13] : memref<2x8x1xf32, #tpu.memory_space<vmem>>, vector<1x8x1xf32>
    %25 = vector.shape_cast %24 : vector<1x8x1xf32> to vector<8x1xf32>
    %26 = vector.shape_cast %22 : vector<8x1xf32> to vector<1x8x1xf32>
    tpu.vector_store %arg12[%23, %c0_12, %c0_13], %26 {strides = array<i32>} : memref<2x8x1xf32, #tpu.memory_space<vmem>>, vector<1x8x1xf32>,
    %c3_i32 = arith.constant 3 : i32
    %27 = arith.cmpi eq, %arg0, %c3_i32 : i32
    %28 = arith.extui %27 : i1 to i32
    %c0_i32_14 = arith.constant 0 : i32
    %29 = arith.cmpi ne, %28, %c0_i32_14 : i32
    scf.if %29 {
      %30 = arith.index_cast %arg1 : i32 to index
      %c0_15 = arith.constant 0 : index
      %c0_16 = arith.constant 0 : index
      %31 = vector.load %arg12[%30, %c0_15, %c0_16] : memref<2x8x1xf32, #tpu.memory_space<vmem>>, vector<1x8x1xf32>
      %32 = vector.shape_cast %31 : vector<1x8x1xf32> to vector<8x1xf32>
      %cst_17 = arith.constant 1.000000e+00 : f32
      %33 = vector.broadcast %cst_17 : f32 to vector<8x1xf32>
      %34 = arith.maximumf %32, %33 : vector<8x1xf32>
      %cst_18 = arith.constant 1.000000e+00 : f32
      %35 = vector.broadcast %cst_18 : f32 to vector<8x1xf32>
      %36 = arith.divf %35, %34 : vector<8x1xf32>
      %37 = arith.index_cast %arg1 : i32 to index
      %c0_19 = arith.constant 0 : index
      %c0_20 = arith.constant 0 : index
      %38 = vector.load %arg11[%37, %c0_19, %c0_20] : memref<2x8x128xf32, #tpu.memory_space<vmem>>, vector<1x8x128xf32>
      %39 = vector.shape_cast %38 : vector<1x8x128xf32> to vector<8x128xf32>
      %40 = vector.broadcast %36 : vector<8x1xf32> to vector<8x128xf32>
      %41 = arith.mulf %39, %40 : vector<8x128xf32>
      %c0_21 = arith.constant 0 : index
      %c0_22 = arith.constant 0 : index
      %42 = vector.load %arg4[%c0_21, %c0_22] : memref<1x128xf32, #tpu.memory_space<vmem>>, vector<1x128xf32>
      %43 = vector.broadcast %42 : vector<1x128xf32> to vector<8x128xf32>
      %44 = arith.addf %41, %43 : vector<8x128xf32>
      %45 = math.tanh %44 : vector<8x128xf32>
      %c0_23 = arith.constant 0 : index
      %c0_24 = arith.constant 0 : index
      %46 = vector.load %arg5[%c0_23, %c0_24] : memref<128x128xf32, #tpu.memory_space<vmem>>, vector<128x128xf32>
      %cst_25 = arith.constant dense<0.000000e+00> : vector<8x128xf32>
      %47 = tpu.matmul %45, %46, %cst_25 {dimension_numbers = #tpu.dot_dimension_numbers<[1], [0], [0], [1], [0, 0, 1, 1], [], []>} : vector<8x128xf32>, vector<128x128xf32>, vector<8x128xf32> -> vector<8x128xf32>
      %c0_26 = arith.constant 0 : index
      %c0_27 = arith.constant 0 : index
      %48 = vector.load %arg6[%c0_26, %c0_27] : memref<1x128xf32, #tpu.memory_space<vmem>>, vector<1x128xf32>
      %49 = vector.broadcast %48 : vector<1x128xf32> to vector<8x128xf32>
      %50 = arith.addf %47, %49 : vector<8x128xf32>
      %51 = math.tanh %50 : vector<8x128xf32>
      %c0_28 = arith.constant 0 : index
      %c0_29 = arith.constant 0 : index
      %52 = vector.load %arg7[%c0_28, %c0_29] : memref<128x16xf32, #tpu.memory_space<vmem>>, vector<128x16xf32>
      %cst_30 = arith.constant dense<0.000000e+00> : vector<8x16xf32>
      %53 = tpu.matmul %51, %52, %cst_30 {dimension_numbers = #tpu.dot_dimension_numbers<[1], [0], [0], [1], [0, 0, 1, 1], [], []>} : vector<8x128xf32>, vector<128x16xf32>, vector<8x16xf32> -> vector<8x16xf32>
      %c0_31 = arith.constant 0 : index
      %c0_32 = arith.constant 0 : index
      %54 = vector.load %arg8[%c0_31, %c0_32] : memref<1x16xf32, #tpu.memory_space<vmem>>, vector<1x16xf32>
      %55 = vector.broadcast %54 : vector<1x16xf32> to vector<8x16xf32>
      %56 = arith.addf %53, %55 : vector<8x16xf32>
      %57 = vector.extract_strided_slice %56 {offsets = [0, 0], sizes = [8, 8], strides = [1, 1]} : vector<8x16xf32> to vector<8x8xf32>
      %58 = vector.extract_strided_slice %56 {offsets = [0, 8], sizes = [8, 8], strides = [1, 1]} : vector<8x16xf32> to vector<8x8xf32>
      %cst_33 = arith.constant 1.000000e+00 : f32
      %59 = vector.broadcast %cst_33 : f32 to vector<8x8xf32>
      %60 = arith.addf %59, %58 : vector<8x8xf32>
      %61 = arith.mulf %57, %57 : vector<8x8xf32>
      %62 = arith.subf %60, %61 : vector<8x8xf32>
      %63 = math.exp %58 : vector<8x8xf32>
      %64 = arith.subf %62, %63 : vector<8x8xf32>
      %cst_34 = arith.constant dense<0.000000e+00> : vector<8xf32>
      %65 = vector.multi_reduction <add>, %64, %cst_34 [1] : vector<8x8xf32> to vector<8xf32>
      %66 = vector.shape_cast %65 : vector<8xf32> to vector<8x1xf32>
      %cst_35 = arith.constant -5.000000e-01 : f32
      %67 = vector.broadcast %cst_35 : f32 to vector<8x1xf32>
      %68 = arith.mulf %67, %66 : vector<8x1xf32>
      %69 = arith.index_cast %arg1 : i32 to index
      %c0_36 = arith.constant 0 : index
      %c0_37 = arith.constant 0 : index
      %70 = vector.load %arg10[%69, %c0_36, %c0_37] : memref<2x8x1xf32, #tpu.memory_space<vmem>>, vector<1x8x1xf32>
      %71 = vector.shape_cast %70 : vector<1x8x1xf32> to vector<8x1xf32>
      %72 = vector.shape_cast %68 : vector<8x1xf32> to vector<1x8x1xf32>
      tpu.vector_store %arg10[%69, %c0_36, %c0_37], %72 {strides = array<i32>} : memref<2x8x1xf32, #tpu.memory_space<vmem>>, vector<1x8x1xf32>,
      %cst_38 = arith.constant dense<0xFF800000> : vector<8xf32>
      %73 = vector.multi_reduction <maximumf>, %57, %cst_38 [1] : vector<8x8xf32> to vector<8xf32>
      %74 = vector.shape_cast %73 : vector<8xf32> to vector<8x1xf32>
      %75 = vector.broadcast %74 : vector<8x1xf32> to vector<8x8xf32>
      %76 = arith.subf %57, %75 : vector<8x8xf32>
      %77 = math.exp %76 : vector<8x8xf32>
      %cst_39 = arith.constant dense<0.000000e+00> : vector<8xf32>
      %78 = vector.multi_reduction <add>, %77, %cst_39 [1] : vector<8x8xf32> to vector<8xf32>
      %79 = vector.shape_cast %78 : vector<8xf32> to vector<8x1xf32>
      %80 = vector.broadcast %79 : vector<8x1xf32> to vector<8x8xf32>
      %81 = arith.divf %77, %80 : vector<8x8xf32>
      %82 = arith.index_cast %arg1 : i32 to index
      %c0_40 = arith.constant 0 : index
      %c0_41 = arith.constant 0 : index
      %83 = vector.load %arg9[%82, %c0_40, %c0_41] : memref<2x8x8xf32, #tpu.memory_space<vmem>>, vector<1x8x8xf32>
      %84 = vector.shape_cast %83 : vector<1x8x8xf32> to vector<8x8xf32>
      %85 = vector.shape_cast %81 : vector<8x8xf32> to vector<1x8x8xf32>
      tpu.vector_store %arg9[%82, %c0_40, %c0_41], %85 {strides = array<i32>} : memref<2x8x8xf32, #tpu.memory_space<vmem>>, vector<1x8x8xf32>,
    } else {
    }
    return
  }
  func.func @transform_0(%arg0: i32, %arg1: i32) -> (i32, i32) {
    %c0_i32 = arith.constant 0 : i32
    return %arg1, %arg0 : i32, i32
  }
  func.func @transform_1(%arg0: i32, %arg1: i32) -> (i32, i32) {
    %c0_i32 = arith.constant 0 : i32
    %c0_i32_0 = arith.constant 0 : i32
    return %arg0, %c0_i32 : i32, i32
  }
  func.func @transform_2(%arg0: i32, %arg1: i32) -> (i32, i32) {
    %c0_i32 = arith.constant 0 : i32
    %c0_i32_0 = arith.constant 0 : i32
    %c0_i32_1 = arith.constant 0 : i32
    return %c0_i32, %c0_i32_0 : i32, i32
  }
  func.func @transform_3(%arg0: i32, %arg1: i32) -> (i32, i32) {
    %c0_i32 = arith.constant 0 : i32
    %c0_i32_0 = arith.constant 0 : i32
    %c0_i32_1 = arith.constant 0 : i32
    return %c0_i32, %c0_i32_0 : i32, i32
  }
  func.func @transform_4(%arg0: i32, %arg1: i32) -> (i32, i32) {
    %c0_i32 = arith.constant 0 : i32
    %c0_i32_0 = arith.constant 0 : i32
    %c0_i32_1 = arith.constant 0 : i32
    return %c0_i32, %c0_i32_0 : i32, i32
  }
  func.func @transform_5(%arg0: i32, %arg1: i32) -> (i32, i32) {
    %c0_i32 = arith.constant 0 : i32
    %c0_i32_0 = arith.constant 0 : i32
    %c0_i32_1 = arith.constant 0 : i32
    return %c0_i32, %c0_i32_0 : i32, i32
  }
  func.func @transform_6(%arg0: i32, %arg1: i32) -> (i32, i32) {
    %c0_i32 = arith.constant 0 : i32
    %c0_i32_0 = arith.constant 0 : i32
    %c0_i32_1 = arith.constant 0 : i32
    return %c0_i32, %c0_i32_0 : i32, i32
  }
  func.func @transform_7(%arg0: i32, %arg1: i32) -> (i32, i32, i32) {
    %c0_i32 = arith.constant 0 : i32
    %c0_i32_0 = arith.constant 0 : i32
    %c0_i32_1 = arith.constant 0 : i32
    %c0_i32_2 = arith.constant 0 : i32
    return %c0_i32, %c0_i32_0, %c0_i32_1 : i32, i32, i32
  }
  func.func @transform_8(%arg0: i32, %arg1: i32) -> (i32, i32, i32) {
    %c0_i32 = arith.constant 0 : i32
    %c0_i32_0 = arith.constant 0 : i32
    %c0_i32_1 = arith.constant 0 : i32
    %c0_i32_2 = arith.constant 0 : i32
    return %c0_i32, %c0_i32_0, %c0_i32_1 : i32, i32, i32
  }
}

</mosaic_0001>

<bundles_post_ra>
// kernel: tpu_custom_call.1
= control target key start
LH: loop header
LB: loop body
LE: loop exit
PB: predicated region body
PF: predicated region fallthrough
CT: control target
= control target key end

     0   :  { %s1953_s0 = inlined_call_operand.hbm [shape: f32[16,512], index: 0, kind: input, shape index: {}]   ;;  %s1954_s1 = inlined_call_operand.hbm [shape: bf16[512,128], index: 1, kind: input, shape index: {}]   ;;  %s1955_s2 = inlined_call_operand.vmem [shape: f32[1,128], index: 2, kind: input, shape index: {}]   ;;  %s1956_s3 = inlined_call_operand.vmem [shape: f32[128,128], index: 3, kind: input, shape index: {}]   ;;  %s1957_s4 = inlined_call_operand.vmem [shape: f32[1,128], index: 4, kind: input, shape index: {}]   ;;  %s1958_s5 = inlined_call_operand.vmem [shape: f32[128,16], index: 5, kind: input, shape index: {}]   ;;  %s1959_s6 = inlined_call_operand.vmem [shape: f32[1,16], index: 6, kind: input, shape index: {}]   ;;  %s1960_s7 = inlined_call_operand.hbm [shape: f32[2,8,8], index: 7, kind: output, shape index: {0}]   ;;  %s1961_s8 = inlined_call_operand.vmem [shape: f32[2,8,1], index: 8, kind: output, shape index: {1}]  }
   0x1   :  { %1968 = sst [smem:[#allocation16_spill]] %s1957_s4 }
   0x2   :  { %1969 = sst [smem:[#allocation17_spill]] %s1959_s6 }
   0x3   :  { %1970 = sst [smem:[#allocation18_spill]] %s1960_s7 }
   0x4   :  { %1971 = sst [smem:[#allocation19_spill]] %s1961_s8 }
   0x5   :  { %14 = vsyncpa [#allocation5], 0 }
   0x6   :  { %16 = vsyncpa [#allocation5 + $0x1], 0 }
   0x7   :  { %17 = vsyncpa [#allocation8], 0 }
   0x8   :  { %19 = vsyncpa [#allocation8 + $0x1], 0 }
   0x9   :  { %20 = vsyncpa [#allocation6], 0  ;;  %s1516_s27 = smov 0   ;;  %s1518_s28 = smov 0  }
   0xa   :  { %s1520_s29 = smov 0   ;;  %s1522_s30 = smov 0  }
   0xb   :  { %s1524_s9 = smov 0   ;;  %s1526_s10 = smov 0  }
   0xc   :  { %s1528_s11 = smov 0   ;;  %s1530_s12 = smov 0  }
   0xd   :  { %s1532_s13 = smov 0   ;;  %s1534_s14 = smov 0  }
   0xe   :  { %s1536_s15 = smov 0  }
   0xf LB: > { %s1962_s16 = sadd.s32 4294967295, %s1452_s15   ;;  %s35_s17 = sadd.s32 1, %s1444_s13  ;;  %s1452_s15 = sphi %s1536_s15, %s26_s15   ;;  %s1448_s14 = sphi %s1534_s14, %s2005_s14   ;;  %s1444_s13 = sphi %s1532_s13, %s2004_s13   ;;  %s1440_s12 = sphi %s1530_s12, %s2003_s12   ;;  %s1436_s11 = sphi %s1528_s11, %s2002_s11   ;;  %s1432_s10 = sphi %s1526_s10, %s2001_s10   ;;  %s1428_s9 = sphi %s1524_s9, %s2000_s9   ;;  %s1424_s30 = sphi %s1522_s30, %s1999_s30   ;;  %s1420_s29 = sphi %s1520_s29, %s1998_s29   ;;  %s1416_s28 = sphi %s1518_s28, %s1997_s28   ;;  %s1412_s27 = sphi %s1516_s27, %s1996_s27  }
  0x10   : > { %p36_p0 = scmp.ge.s32.totalorder %s35_s17, 2  ;;  %s38_s18 = sadd.s32 1, %s1448_s14 }
  0x11   : > { %s47_s19 = sadd.s32 1, %s1432_s10  ;;  %p54_p1 = scmp.ne.s32.totalorder %s1432_s10, %s1428_s9 }
  0x12   : > { %s2007_s17 = smov (%p36_p0, %s35_s17), 0  ;;  %s2009_s18 = smov (!%p36_p0, %s38_s18), %s1448_s14 }
  0x13   : > { %1972 = sst [smem:[#allocation13_spill]] %s2007_s17  ;;  %s42_s20 = ssub.s32 %s1444_s13, %s2007_s17 }
  0x14   : > { %p55_p2 = scmp.eq.s32.totalorder %s1452_s15, 0  ;;  %p40_p3 = scmp.ge.s32.totalorder %s2009_s18, 4 }
  0x15   : > { %p60_p4 = scmp.ne.s32.totalorder %s1428_s9, %s1424_s30  ;;  %p1590_p6 = scmp.eq.s32.totalorder %s1962_s16, 0 }
  0x16   : > { %p1584_p5 = por %p55_p2, %p54_p1  ;;  %s2011_s18 = smov (%p40_p3, %s2009_s18), 0 }
  0x17   : > { %1975 = sst [smem:[#allocation14_spill]] %s2011_s18  ;;  %p1598_p7 = por %p1590_p6, %p60_p4 }
  0x18   : > { %s73_s24 = sadd.s32 1, %s1420_s29  ;;  %s43_s25 = ssub.s32 %s1448_s14, %s2011_s18 }
  0x19   : > { %s1976_s23 = scalar_select %p1598_p7, 1, 0 }
  0x1a   : > { %p80_p8 = scmp.ne.s32.totalorder %s1420_s29, %s1416_s28  ;;  %s44_s26 = sor.u32 %s43_s25, %s42_s20 }
  0x1b   : > { %p71_p9 = scmp.eq.s32.totalorder %s43_s25, 0  ;;  %p45_p10 = scmp.eq.s32.totalorder %s44_s26, 0 }
  0x1c   : > { %p1609_p11 = por %p80_p8, %p55_p2  ;;  %p86_p12 = scmp.ne.s32.totalorder %s1416_s28, %s1412_s27 }
  0x1d   : > { %s1614_s16 = scalar_select %p71_p9, %s1420_s29, %s73_s24  }
  0x1e   : > { %s1617_s17 = scalar_select %p45_p10, %s1432_s10, %s47_s19  }
  0x1f   : > { %1978 = sst [smem:[#allocation15_spill]] %s1614_s16  ;;  %p1149_p13 = scmp.lt.s32.totalorder %s1452_s15, 8 }
  0x20   : > { %s272_s18 = sand.u32 1, %s1432_s10   ;;  %p1625_p0 = por %p86_p12, %p1590_p6 }
  0x21   : > { %s848_s25 = sshll.u32 %s272_s18, 3  ;;  %s849_s26 = sshll.u32 %s1444_s13, 2 }
  0x22   : > { %s1979_s20 = scalar_select %p1625_p0, 1, 0 }
  0x23   : > { %s281_s7 = sadd.s32 %s1448_s14, %s849_s26  ;;  %s276_s6 = scalar_lea.vmem [#allocation4], %s848_s25 }
  0x24   : > { %s850_s8 = sshll.u32 %s281_s7, 7  ;;  %s285_s4 = sshll.u32 %s276_s6, 4  ;;  %s1636_s4 = int_to_ptr.vmem [resolvable:$true] %s285_s4 }
  0x25   : > { %s1634_s19 = scalar_lea.hbm %s1953_s0, %s850_s8  ;;  %p1640_p1 = pnand %p1149_p13, %p1584_p5 }
  0x26   : > { %p1646_p2 = pnand %p1149_p13, %p1609_p11  ;;  %s273_s7 = scalar_lea.sflag [#allocation5], %s272_s18 }
  0x27   : > { %s1268_s8 = scalar_lea.hbm %s1634_s19, 128  ;;  %p1270_p8 = pneg %p1640_p1 }
  0x28   : > { %p1269_p6 = scmp.ne.s32.totalorder %s1634_s19, %s1268_s8  ;;  %s1273_s22 = scalar_lea.hbm %s1953_s0, 1024 }
  0x29   : > { %p1274_p10 = scmp.lt.u32.totalorder %s1634_s19, %s1953_s0  ;;  %p1275_p11 = scmp.lt.u32.totalorder %s1273_s22, %s1268_s8 }
  0x2a   : > { %p1271_p5 = pnand %p1270_p8, %p1269_p6  ;;  %p1277_p13 = scmp.lt.u32.totalorder %s1268_s8, %s1634_s19 }
  0x2b   : > { %p1276_p12 = por %p1275_p11, %p1274_p10 }
  0x2c   : > { %p1272_p9 = pneg %p1271_p5 }
  0x2d   : > { %p1278_p3 = por %p1277_p13, %p1276_p12 }
  0x2f   : > { %p1279_p4 = pnand %p1278_p3, %p1272_p9 }
  0x31   : > { %1282 = shalt.err (!%p1279_p4)
}
  0x32   : > { %s1283_s18 = scalar_lea.vmem %s1636_s4, 128  ;;  %s1454_s26 = smov [#allocation4]  }
  0x33   : > { %p1284_p6 = scmp.ne.s32.totalorder %s1636_s4, %s1283_s18  ;;  %s1288_s24 = sshll.u32 %s1454_s26, 4  ;;  %s1289_s24 = int_to_ptr.vmem [resolvable:$false] %s1288_s24 }
  0x34   : > { %s1290_s16 = scalar_lea.vmem %s1289_s24, 256  ;;  %p1291_p7 = scmp.lt.s32.totalorder %s1636_s4, %s1289_s24 }
  0x35   : > { %p1286_p5 = pnand %p1284_p6, %p1270_p8  ;;  %p1292_p10 = scmp.lt.s32.totalorder %s1290_s16, %s1283_s18 }
  0x37   : > { %p1287_p0 = pneg %p1286_p5  ;;  %p1293_p11 = por %p1292_p10, %p1291_p7 }
  0x39   : > { %p1294_p12 = pnand %p1293_p11, %p1287_p0 }
  0x3b   : > { %1297 = shalt.err (!%p1294_p12)
}
  0x3c   : > { %1145 = dma.hbm_to_vmem [thread:$0]  (!%p1640_p1), %s1634_s19, 128, %s1636_s4, %s273_s7  }
  0x3d   : > { %p1982_p3 = scmp.lt.s32.totalorder %s1452_s15, 9  ;;  %p1983_p4 = scmp.ge.s32.totalorder %s1452_s15, 1 }
  0x3e   : > { %s292_s21 = sand.u32 1, %s1420_s29   ;;  %s866_s30 = sshll.u32 %s1448_s14, 10 }
  0x3f   : > { %p1681_p8 = pnand %p1983_p4, %p1982_p3  ;;  %s851_s22 = sshll.u32 %s292_s21, 6 }
  0x40   : > { %s1690_s18 = scalar_lea.hbm %s1954_s1, %s866_s30  ;;  %s296_s26 = scalar_lea.vmem [#allocation7], %s851_s22 }
  0x41   : > { %s303_s4 = sshll.u32 %s296_s26, 4  ;;  %s1694_s19 = scalar_lea.sflag [#allocation8], %s292_s21  ;;  %s1692_s4 = int_to_ptr.vmem [resolvable:$true] %s303_s4 }
  0x42   : > { %s1298_s7 = scalar_lea.hbm %s1690_s18, 1024  ;;  %p1300_p0 = pneg %p1646_p2 }
  0x43   : > { %p1299_p7 = scmp.ne.s32.totalorder %s1690_s18, %s1298_s7  ;;  %s1303_s30 = scalar_lea.hbm %s1954_s1, 4096 }
  0x44   : > { %p1304_p13 = scmp.lt.u32.totalorder %s1690_s18, %s1954_s1  ;;  %p1305_p6 = scmp.lt.u32.totalorder %s1303_s30, %s1298_s7 }
  0x45   : > { %p1301_p1 = pnand %p1300_p0, %p1299_p7  ;;  %p1307_p10 = scmp.lt.u32.totalorder %s1298_s7, %s1690_s18 }
  0x46   : > { %p1306_p5 = por %p1305_p6, %p1304_p13 }
  0x47   : > { %p1302_p9 = pneg %p1301_p1 }
  0x48   : > { %p1308_p11 = por %p1307_p10, %p1306_p5 }
  0x4a   : > { %p1309_p12 = pnand %p1308_p11, %p1302_p9 }
  0x4c   : > { %1312 = shalt.err (!%p1309_p12)
}
  0x4d   : > { %s1313_s21 = scalar_lea.vmem %s1692_s4, 1024  ;;  %s1455_s22 = smov [#allocation7]  }
  0x4e   : > { %p1314_p3 = scmp.ne.s32.totalorder %s1692_s4, %s1313_s21  ;;  %s1318_s26 = sshll.u32 %s1455_s22, 4  ;;  %s1319_s26 = int_to_ptr.vmem [resolvable:$false] %s1318_s26 }
  0x4f   : > { %s1320_s24 = scalar_lea.vmem %s1319_s26, 2048  ;;  %p1321_p1 = scmp.lt.s32.totalorder %s1692_s4, %s1319_s26 }
  0x50   : > { %p1316_p4 = pnand %p1314_p3, %p1300_p0  ;;  %p1322_p13 = scmp.lt.s32.totalorder %s1320_s24, %s1313_s21 }
  0x52   : > { %p1317_p7 = pneg %p1316_p4  ;;  %p1323_p6 = por %p1322_p13, %p1321_p1 }
  0x54   : > { %p1324_p5 = pnand %p1323_p6, %p1317_p7 }
  0x56   : > { %1327 = shalt.err (!%p1324_p5)
}
  0x57   : > { %s1456_s7 = smov 64   ;;  %s1457_s16 = smov 4  }
  0x58   : > { %1148 = dma.hbm_to_vmem [thread:$0]  (!%p1646_p2), %s1690_s18, 1024, %s1692_s4, %s1694_s19, %s1456_s7, %s1456_s7, %s1457_s16  }
  0x59   : > { %315 = sbr.rel (%p1681_p8) target bundleno = 1275 (0x4fb), region = 48  ;;  %s317_s30 = sand.u32 (!%p1681_p8), 1, %s1428_s9  }
  0x5a   : > { %s1725_s25 = sshll.u32 (!%p1681_p8), %s317_s30, 3  ;;  %s318_s27 = scalar_lea.sflag (!%p1681_p8), [#allocation5], %s317_s30 }
  0x5b   : > { %s321_s21 = scalar_lea.vmem (!%p1681_p8), [#allocation4], %s1725_s25  ;;  %p1985_p0 = scmp.ne.s32.totalorder (!%p1681_p8), %s1976_s23, 0 }
  0x60   : > { %1399 = dma.done.wait (%p1985_p0), %s318_s27, 128  }
  0x61   : > { %1401 = vsyncadd (%p1985_p0), %s318_s27, 4294967168  ;;  %s326_s6 = sand.u32 1, %s1416_s28   ;;  %p1986_p2 = scmp.ne.s32.totalorder %s1979_s20, 0 }
  0x62   : > { %s856_s18 = sshll.u32 %s326_s6, 6  ;;  %s327_s4 = scalar_lea.sflag [#allocation8], %s326_s6 }
  0x63   : > { %s1733_s8 = scalar_lea.vmem [#allocation7], %s856_s18 }
  0x64   : > { %1403 = dma.done.wait (%p1986_p2), %s327_s4, 1024  }
  0x65   : > { %1405 = vsyncadd (%p1986_p2), %s327_s4, 4294966272  ;;  %p364_p8 = scmp.eq.s32.totalorder %s1440_s12, 0  ;;  %p365_p9 = scmp.eq.s32.totalorder %s1436_s11, 0 }
  0x67   : > { %p366_p10 = pnand %p365_p9, %p364_p8 }
  0x68   : > { %vm372_vm0 = vcmask (!%p366_p10), 7168   ;;  %v1458_v0 = vmov (!%p366_p10), 0.0  }
  0x69   : > { %369 = sbr.rel (%p366_p10) target bundleno = 112 (0x70), region = 60  ;;  %370 = vst [vmem:[#allocation2] sm:$0xff] (!%p366_p10), %v1458_v0  ;;  %371 = vst [vmem:[#allocation2 + $0x8] sm:$0xff] (!%p366_p10), %v1458_v0 }
  0x6a   : > { %373 = vst.msk [vmem:[#allocation3] sm:$0xff] (!%p366_p10), %vm372_vm0, %v1458_v0  ;;  %374 = vst.msk [vmem:[#allocation3 + $0x8] sm:$0xff] (!%p366_p10), %vm372_vm0, %v1458_v0 }
  0x70 PF: > { %v868_v1 = vld [vmem:[%s1733_s8] sm:$0xff]   ;;  %v1459_v2 = vmov 0.0|0.0   ;;  %vm1460_vm1 = vmmov 0   ;;  %v1461_v3 = vmov 0.0   ;;  %v375_v4 = vld [vmem:[%s321_s21] sm:$0xff]  ;;  %v899_v5 = vld [vmem:[%s1733_s8 + $0x8] sm:$0xff]  }
  0x71   : > { %1062 = vmatprep.subr.bf16.mxu0 %v1459_v2  ;;  %989 = vmatprep.mubr.msk.f32.mxu0 %vm1460_vm1, %v1461_v3  ;;  %v900_v6 = vld [vmem:[%s1733_s8 + $0x10] sm:$0xff]   ;;  %v901_v7 = vld [vmem:[%s1733_s8 + $0x18] sm:$0xff]   ;;  %v902_v8 = vld [vmem:[%s1733_s8 + $0x20] sm:$0xff]   ;;  %s1750_s23 = sshll.u32 %s1436_s11, 3  ;;  %vm488_vm2 = vcmask 7168   ;;  %p858_p11 = scmp.ne.s32.totalorder %s1440_s12, 3 }
  0x72   : > { %1064 = vmatpush3.bf16.msra.mxu0 %v868_v1  ;;  %485 = vadd.xlane.f32.xlu0 %v375_v4  ;;  %v903_v9 = vld [vmem:[%s1733_s8 + $0x28] sm:$0xff]   ;;  %v904_v10 = vld [vmem:[%s1733_s8 + $0x30] sm:$0xff]   ;;  %v905_v11 = vld [vmem:[%s1733_s8 + $0x38] sm:$0xff]   ;;  %s483_s20 = scalar_lea.vmem [#allocation3], %s1750_s23  ;;  %s1755_s19 = scalar_lea.vmem [#allocation2], %s1750_s23  ;;  %v1462_v22 = vmov (!%p858_p11), 0  }
  0x73   : > { %1065 = vmatprep.subr.bf16.mxu0 %v1459_v2  ;;  %v484_v12 = vld [vmem:[%s483_s20] sm:$0xff]  ;;  %v515_v21 = vld [vmem:[%s1956_s3 + $0x8] sm:$0xff] (!%p858_p11)  ;;  %1255 = vset.pattern.permute.xlu0 (!%p858_p11), %v1462_v22  ;;  %v1463_v24 = vmov (!%p858_p11), 0.0|0.0   ;;  %v516_v26 = vld [vmem:[%s1956_s3 + $0x10] sm:$0xff] (!%p858_p11)  ;;  %vm1464_vm3 = vmmov (!%p858_p11), 0   ;;  %v1465_v42 = vmov (!%p858_p11), 0.0  }
  0x74   : > { %v378_v15 = vld [vmem:[%s1755_s19] sm:$0xff]  ;;  %v517_v27 = vld [vmem:[%s1956_s3 + $0x18] sm:$0xff] (!%p858_p11)  ;;  %1110 = vmatprep.subr.bf16.mxu1 (!%p858_p11), %v1463_v24  ;;  %v519_v30 = vld [vmem:[%s1956_s3 + $0x28] sm:$0xff] (!%p858_p11)  ;;  %1059 = vmatprep.mubr.msk.f32.mxu1 (!%p858_p11), %vm1464_vm3, %v1465_v42  ;;  %s1987_s24 = sld [smem:[#allocation16_spill]] (!%p858_p11)  ;;  %s1988_s12 = sld [smem:[#allocation17_spill]] (!%p858_p11)  ;;  %vm715_vm4 = vcmask (!%p858_p11), 64512  }
  0x75   : > { %v514_v20 = vld [vmem:[%s1956_s3] sm:$0xff] (!%p858_p11)  ;;  %v1090_v28 = vpack.c.bf16 (!%p858_p11), %v517_v27, %v516_v26  ;;  %v520_v32 = vld [vmem:[%s1956_s3 + $0x30] sm:$0xff] (!%p858_p11)  ;;  %v521_v33 = vld [vmem:[%s1956_s3 + $0x38] sm:$0xff] (!%p858_p11)  ;;  %s1466_s30 = smov (!%p858_p11), 8   ;;  %s1467_s25 = smov (!%p858_p11), 120  }
  0x76   : > { %1067 = vmatpush3.bf16.msra.mxu0 %v899_v5  ;;  %v1087_v25 = vpack.c.bf16 (!%p858_p11), %v515_v21, %v514_v20  ;;  %v518_v29 = vld [vmem:[%s1956_s3 + $0x20] sm:$0xff] (!%p858_p11)  ;;  %v1096_v34 = vpack.c.bf16 (!%p858_p11), %v521_v33, %v520_v32  ;;  %v523_v36 = vld [vmem:[%s1956_s3 + $0x48] sm:$0xff] (!%p858_p11)  ;;  %v524_v39 = vld [vmem:[%s1956_s3 + $0x50] sm:$0xff] (!%p858_p11)  ;;  %s733_s27 = scalar_lea.vmem (!%p858_p11), [#allocation9], %s1750_s23  ;;  %s1989_s6 = sld [smem:[#allocation19_spill]] (!%p858_p11) }
  0x77   : > { %1068 = vmatprep.subr.bf16.mxu0 %v1459_v2  ;;  %v1093_v31 = vpack.c.bf16 (!%p858_p11), %v519_v30, %v518_v29  ;;  %v522_v35 = vld [vmem:[%s1956_s3 + $0x40] sm:$0xff] (!%p858_p11)  ;;  %v525_v40 = vld [vmem:[%s1956_s3 + $0x58] sm:$0xff] (!%p858_p11)  ;;  %v527_v44 = vld [vmem:[%s1956_s3 + $0x68] sm:$0xff] (!%p858_p11) }
  0x78   : > { %v1099_v38 = vpack.c.bf16 (!%p858_p11), %v523_v36, %v522_v35  ;;  %v1102_v41 = vpack.c.bf16 (!%p858_p11), %v525_v40, %v524_v39  ;;  %v526_v43 = vld [vmem:[%s1956_s3 + $0x60] sm:$0xff] (!%p858_p11)  ;;  %v528_v46 = vld [vmem:[%s1956_s3 + $0x70] sm:$0xff] (!%p858_p11)  ;;  %v529_v47 = vld [vmem:[%s1956_s3 + $0x78] sm:$0xff] (!%p858_p11) }
  0x79   : > { %v1105_v45 = vpack.c.bf16 (!%p858_p11), %v527_v44, %v526_v43  ;;  %v1108_v48 = vpack.c.bf16 (!%p858_p11), %v529_v47, %v528_v46  ;;  %v608_v49 = vld [vmem:[%s1958_s5] sm:$0xff] (!%p858_p11)  ;;  %v609_v50 = vld [vmem:[%s1958_s5 + $0x8] sm:$0xff] (!%p858_p11)  ;;  %v610_v51 = vld [vmem:[%s1958_s5 + $0x10] sm:$0xff] (!%p858_p11) }
  0x7a   : > { %1070 = vmatpush3.bf16.msra.mxu0 %v900_v6  ;;  %v1111_v52 = vpack.c.bf16 (!%p858_p11), %v609_v50, %v608_v49  ;;  %v611_v53 = vld [vmem:[%s1958_s5 + $0x18] sm:$0xff] (!%p858_p11)  ;;  %v612_v55 = vld [vmem:[%s1958_s5 + $0x20] sm:$0xff] (!%p858_p11)  ;;  %v613_v56 = vld [vmem:[%s1958_s5 + $0x28] sm:$0xff] (!%p858_p11) }
  0x7b   : > { %1071 = vmatprep.subr.bf16.mxu0 %v1459_v2  ;;  %v1114_v54 = vpack.c.bf16 (!%p858_p11), %v611_v53, %v610_v51  ;;  %v1117_v57 = vpack.c.bf16 (!%p858_p11), %v613_v56, %v612_v55  ;;  %v614_v58 = vld [vmem:[%s1958_s5 + $0x30] sm:$0xff] (!%p858_p11)  ;;  %v615_v59 = vld [vmem:[%s1958_s5 + $0x38] sm:$0xff] (!%p858_p11)  ;;  %v616_v61 = vld [vmem:[%s1958_s5 + $0x40] sm:$0xff] (!%p858_p11) }
  0x7c   : > { %1112 = vmatpush3.bf16.msra.mxu1 (!%p858_p11), %v1111_v52  ;;  %v1120_v60 = vpack.c.bf16 (!%p858_p11), %v615_v59, %v614_v58  ;;  %v617_v62 = vld [vmem:[%s1958_s5 + $0x48] sm:$0xff] (!%p858_p11)  ;;  %v859_v1 = vld [vmem:[%s1955_s2] ss:$0 sm:$0xff] (!%p858_p11)  ;;  %v618_v6 = vld [vmem:[%s1958_s5 + $0x50] sm:$0xff] (!%p858_p11)  ;;  %s720_s18 = scalar_lea.vmem (!%p858_p11), %s1989_s6, %s1750_s23 }
  0x7d   : > { %1113 = vmatprep.subr.bf16.mxu1 (!%p858_p11), %v1463_v24  ;;  %v1123_v63 = vpack.c.bf16 (!%p858_p11), %v617_v62, %v616_v61  ;;  %v861_v20 = vld [vmem:[%s1988_s12] ss:$0 sm:$0xff] (!%p858_p11) }
  0x7e   : > { %1073 = vmatpush3.bf16.msra.mxu0 %v901_v7  ;;  %v619_v7 = vld [vmem:[%s1958_s5 + $0x58] sm:$0xff] (!%p858_p11) }
  0x7f   : > { %1074 = vmatprep.subr.bf16.mxu0 %v1459_v2 }
  0x80   : > { %1115 = vmatpush3.bf16.msra.mxu1 (!%p858_p11), %v1114_v54 }
  0x81   : > { %1116 = vmatprep.subr.bf16.mxu1 (!%p858_p11), %v1463_v24 }
  0x82   : > { %1076 = vmatpush3.bf16.msra.mxu0 %v902_v8  ;;  %v1126_v8 = vpack.c.bf16 (!%p858_p11), %v619_v7, %v618_v6 }
  0x83   : > { %1077 = vmatprep.subr.bf16.mxu0 %v1459_v2 }
  0x84   : > { %1118 = vmatpush3.bf16.msra.mxu1 (!%p858_p11), %v1117_v57 }
  0x85   : > { %1119 = vmatprep.subr.bf16.mxu1 (!%p858_p11), %v1463_v24 }
  0x86   : > { %1079 = vmatpush3.bf16.msra.mxu0 %v903_v9  ;;  %v620_v9 = vld [vmem:[%s1958_s5 + $0x60] sm:$0xff] (!%p858_p11) }
  0x87   : > { %1080 = vmatprep.subr.bf16.mxu0 %v1459_v2 }
  0x88   : > { %1121 = vmatpush3.bf16.msra.mxu1 (!%p858_p11), %v1120_v60 }
  0x89   : > { %1122 = vmatprep.subr.bf16.mxu1 (!%p858_p11), %v1463_v24 }
  0x8a   : > { %1082 = vmatpush3.bf16.msra.mxu0 %v904_v10  ;;  %v621_v10 = vld [vmem:[%s1958_s5 + $0x68] sm:$0xff] (!%p858_p11) }
  0x8b   : > { %1083 = vmatprep.subr.bf16.mxu0 %v1459_v2 }
  0x8c   : > { %1124 = vmatpush3.bf16.msra.mxu1 (!%p858_p11), %v1123_v63 }
  0x8d   : > { %1125 = vmatprep.subr.bf16.mxu1 (!%p858_p11), %v1463_v24 }
  0x8e   : > { %1085 = vmatpush3.bf16.msra.mxu0 %v905_v11  ;;  %v1129_v11 = vpack.c.bf16 (!%p858_p11), %v621_v10, %v620_v9 }
  0x8f   : > { %1086 = vmatprep.subr.bf16.mxu0 (!%p858_p11), %v1463_v24 }
  0x90   : > { %1127 = vmatpush3.bf16.msra.mxu1 (!%p858_p11), %v1126_v8 }
  0x91   : > { %990 = vmatmul.mubr.f32.vlgmr.msra.gmra.mrb[0].mxu0 %v375_v4  ;;  %1128 = vmatprep.subr.bf16.mxu1 (!%p858_p11), %v1463_v24 }
  0x92   : > { %1088 = vmatpush3.bf16.msra.mxu0 (!%p858_p11), %v1087_v25  ;;  %1024 = vmatprep.mubr.msk.f32.mxu0 (!%p858_p11), %vm1464_vm3, %v1465_v42 }
  0x93   : > { %1089 = vmatprep.subr.bf16.mxu0 (!%p858_p11), %v1463_v24 }
  0x94   : > { %1130 = vmatpush3.bf16.msra.mxu1 (!%p858_p11), %v1129_v11 }
  0x95   : > { %1131 = vmatprep.subr.bf16.mxu1 (!%p858_p11), %v1463_v24 }
  0x96   : > { %1091 = vmatpush3.bf16.msra.mxu0 (!%p858_p11), %v1090_v28 }
  0x97   : > { %1092 = vmatprep.subr.bf16.mxu0 (!%p858_p11), %v1463_v24 }
  0x9a   : > { %1094 = vmatpush3.bf16.msra.mxu0 (!%p858_p11), %v1093_v31 }
  0x9b   : > { %1095 = vmatprep.subr.bf16.mxu0 (!%p858_p11), %v1463_v24 }
  0x9e   : > { %1097 = vmatpush3.bf16.msra.mxu0 (!%p858_p11), %v1096_v34 }
  0x9f   : > { %1098 = vmatprep.subr.bf16.mxu0 (!%p858_p11), %v1463_v24 }
  0xa2   : > { %1100 = vmatpush3.bf16.msra.mxu0 (!%p858_p11), %v1099_v38 }
  0xa3   : > { %1101 = vmatprep.subr.bf16.mxu0 (!%p858_p11), %v1463_v24 }
  0xa6   : > { %1103 = vmatpush3.bf16.msra.mxu0 (!%p858_p11), %v1102_v41 }
  0xa7   : > { %1104 = vmatprep.subr.bf16.mxu0 (!%p858_p11), %v1463_v24 }
  0xaa   : > { %1106 = vmatpush3.bf16.msra.mxu0 (!%p858_p11), %v1105_v45 }
  0xab   : > { %1107 = vmatprep.subr.bf16.mxu0 (!%p858_p11), %v1463_v24 }
  0xae   : > { %1109 = vmatpush3.bf16.msra.mxu0 (!%p858_p11), %v1108_v48 }
  0xff   : > { %v486_v13 = vpop.xlane.xlu0 %485 }
 0x100   : > { %v487_v14 = vadd.f32 %v486_v13, %v484_v12  ;;  %v622_v12 = vld [vmem:[%s1958_s5 + $0x70] sm:$0xff] (!%p858_p11)  ;;  %v623_v13 = vld [vmem:[%s1958_s5 + $0x78] sm:$0xff] (!%p858_p11) }
 0x102   : > { %489 = vst.msk [vmem:[%s483_s20] sm:$0xff] %vm488_vm2, %v487_v14  ;;  %v1132_v14 = vpack.c.bf16 (!%p858_p11), %v623_v13, %v622_v12 }
 0x104   : > { %1133 = vmatpush3.bf16.msra.mxu1 (!%p858_p11), %v1132_v14 }
 0x109   : > { %v494_v19 = vld [vmem:[%s483_s20] sm:$0xff] (!%p858_p11) }
 0x10a   : > { %v495_v23 = vmax.f32 (!%p858_p11), %v494_v19, 1.0 }
 0x10c   : > { %1256 = vrcp.f32 (!%p858_p11), %v495_v23 }
 0x116   : > { %v1257_v37 = vpop.eup (!%p858_p11), %1256 }
 0x117   : > { %501 = vperm.xlu0 (!%p858_p11), %1255, %v1257_v37  }
 0x161   : > { %493 = sbr.rel (%p858_p11) target bundleno = 1243 (0x4db), region = 64 }
 0x164   : > { %v477_v16 = vpop.f32.mrb[0].mxu0 }
 0x165   : > { %v481_v17 = vadd.f32 %v477_v16, %v378_v15  ;;  %v991_v18 = vpop.f32.mrb[1].mxu0  ;;  %v860_v15 = vld [vmem:[%s1987_s24] ss:$0 sm:$0xff] (!%p858_p11) }
 0x167   : > { %482 = vst [vmem:[%s1755_s19] sm:$0xff] %v481_v17 }
 0x16e   : > { %v498_v0 = vld [vmem:[%s1755_s19] sm:$0xff] }
 0x196   : > { %v502_v2 = vpop.permute.xlu0 %501 }
 0x197   : > { %v504_v3 = vmul.f32 %v502_v2, %v498_v0 }
 0x199   : > { %v512_v4 = vadd.f32 %v859_v1, %v504_v3 }
 0x19b   : > { %1258 = vtanh.f32 %v512_v4 }
 0x1a5   : > { %v1259_v5 = vpop.eup %1258 }
 0x1a6   : > { %1025 = vmatmul.mubr.f32.vlgmr.msra.gmra.mrb[0].mxu0 %v1259_v5 }
 0x279   : > { %v603_v16 = vpop.f32.mrb[0].mxu0 }
 0x27a   : > { %v604_v17 = vadd.f32 %v860_v15, %v603_v16  ;;  %v1026_v18 = vpop.f32.mrb[1].mxu0 }
 0x27c   : > { %1260 = vtanh.f32 %v604_v17 }
 0x286   : > { %v1261_v19 = vpop.eup %1260 }
 0x287   : > { %1060 = vmatmul.mubr.f32.vlgmr.msra.gmra.mrb[0].mxu1 %v1261_v19 }
 0x35a   : > { %v697_v21 = vpop.f32.mrb[0].mxu1 }
 0x35b   : > { %v698_v22 = vadd.f32 %v861_v20, %v697_v21  ;;  %v1061_v23 = vpop.f32.mrb[1].mxu1 }
 0x35d   : > { %v722_v24 = vsel %vm715_vm4, %v698_v22, -inf  ;;  %v702_v25 = vmul.f32 %v698_v22, %v698_v22  ;;  %v708_v26 = vmul.f32 1.442695, %v698_v22  ;;  %v701_v27 = vadd.f32 1.0, %v698_v22 }
 0x35e   : > { %723 = vmax.xlane.f32.xlu1 %v722_v24 }
 0x35f   : > { %704 = vrot.lane.b32.xlu0 %v702_v25, %s1466_s30  ;;  %1262 = vpow2.f32 %v708_v26 }
 0x369   : > { %v1263_v30 = vpop.eup %1262 }
 0x3d1   : > { %v705_v28 = vpop.permute.xlu0 %704 }
 0x3d2   : > { %v707_v29 = vsub.f32 %v701_v27, %v705_v28 }
 0x3d4   : > { %v710_v31 = vsub.f32 %v707_v29, %v1263_v30 }
 0x3d6   : > { %712 = vrot.lane.b32.xlu1 %v710_v31, %s1467_s25 }
 0x3eb   : > { %v724_v32 = vpop.xlane.xlu1 %723 }
 0x3ec   : > { %v725_v33 = vsub.f32 %v698_v22, %v724_v32 }
 0x3ee   : > { %v726_v34 = vmul.f32 1.442695, %v725_v33 }
 0x3f0   : > { %1264 = vpow2.f32 %v726_v34 }
 0x3fa   : > { %v1265_v35 = vpop.eup %1264 }
 0x3fb   : > { %v728_v36 = vsel %vm715_vm4, %v1265_v35, 0.0 }
 0x3fc   : > { %729 = vadd.xlane.f32.xlu0 %v728_v36 }
 0x448   : > { %v713_v37 = vpop.permute.xlu1 %712 }
 0x449   : > { %v716_v38 = vsel %vm715_vm4, %v713_v37, 0.0 }
 0x44a   : > { %717 = vadd.xlane.f32.xlu1 %v716_v38 }
 0x489   : > { %v730_v39 = vpop.xlane.xlu0 %729 }
 0x48a   : > { %1266 = vrcp.f32 %v730_v39 }
 0x494   : > { %v1267_v40 = vpop.eup %1266 }
 0x495   : > { %v732_v41 = vmul.f32 %v1267_v40, %v1265_v35 }
 0x497   : > { %734 = vst.msk [vmem:[%s733_s27] sm:$0xff] %vm715_vm4, %v732_v41 }
 0x4d7   : > { %v718_v42 = vpop.xlane.xlu1 %717 }
 0x4d8   : > { %v719_v43 = vmul.f32 -0.5, %v718_v42 }
 0x4da   : > { %721 = vst.msk [vmem:[%s720_s18] sm:$0xff] %vm488_vm2, %v719_v43 }
 0x4db PF: > { %s1990_s4 = sadd.s32 4294967295, %s1452_s15   ;;  %s1468_s20 = smov [#allocation9]  }
 0x4dc   : > { %p1894_p12 = scmp.eq.s32.totalorder %s1990_s4, 7  ;;  %s741_s11 = sshll.u32 %s1468_s20, 4  ;;  %s742_s11 = int_to_ptr.vmem [resolvable:$true] %s741_s11 }
 0x4dd   : > { %s1328_s22 = scalar_lea.vmem %s742_s11, 256  ;;  %p1335_p1 = scmp.lt.s32.totalorder %s742_s11, %s742_s11 }
 0x4de   : > { %p1329_p3 = scmp.ne.s32.totalorder %s742_s11, %s1328_s22  ;;  %p1336_p13 = scmp.lt.s32.totalorder %s1328_s22, %s1328_s22 }
 0x4e0   : > { %p1330_p4 = pnand %p1329_p3, %p1894_p12  ;;  %p1337_p6 = por %p1336_p13, %p1335_p1 }
 0x4e2   : > { %p1331_p7 = pneg %p1330_p4 }
 0x4e4   : > { %p1338_p5 = pnand %p1337_p6, %p1331_p7 }
 0x4e6   : > { %1341 = shalt.err (!%p1338_p5)
}
 0x4e7   : > { %s1992_s24 = sld [smem:[#allocation18_spill]] }
 0x4ed   : > { %s1342_s7 = scalar_lea.hbm %s1992_s24, 256 }
 0x4ee   : > { %p1343_p0 = scmp.ne.s32.totalorder %s1992_s24, %s1342_s7  ;;  %p1348_p9 = scmp.lt.u32.totalorder %s1342_s7, %s1992_s24 }
 0x4f0   : > { %p1344_p2 = pnand %p1343_p0, %p1894_p12 }
 0x4f2   : > { %p1345_p8 = pneg %p1344_p2 }
 0x4f4   : > { %p1350_p10 = pnand %p1348_p9, %p1345_p8 }
 0x4f6   : > { %1353 = shalt.err (!%p1350_p10)
}
 0x4f7   : > { %s1469_s27 = smov 128   ;;  %s1470_s19 = smov 8  }
 0x4f8   : > { %1139 = dma.vmem_to_hbm [thread:$0]  (%p1894_p12), %s742_s11, 256, %s1992_s24, [#allocation6], %s1469_s27, %s1469_s27, %s1470_s19  }
 0x4f9   : > { %1407 = dma.done.wait (%p1894_p12), [#allocation6], 256  }
 0x4fa   : > { %1409 = vsyncadd (%p1894_p12), [#allocation6], 4294967040 }
 0x4fb PF: > { %s26_s15 = sadd.s32 1, %s1452_s15   ;;  %s1993_s18 = sld [smem:[#allocation15_spill]] }
 0x4fc   : > { %p23_p11 = scmp.ge.s32.totalorder %s26_s15, 10   ;;  %s1994_s4 = sld [smem:[#allocation13_spill]] }
 0x4fd   : > { %s1995_s20 = sld [smem:[#allocation14_spill]]  ;;  %s1996_s27 = smov %s1416_s28 }
 0x4fe   : > { %s1997_s28 = smov %s1420_s29  ;;  %s1999_s30 = smov %s1428_s9 }
 0x4ff   : > { %s2000_s9 = smov %s1432_s10  ;;  %s2001_s10 = smov %s1617_s17 }
 0x500   : > { %s2002_s11 = smov %s1444_s13  ;;  %s2003_s12 = smov %s1448_s14 }
 0x501   : > { %s1998_s29 = smov %s1993_s18  ;;  %25 = sbr.rel (!%p23_p11) target bundleno = 15 (0xf), region = 118 }
 0x502   : > { %s2004_s13 = smov %s1994_s4 }
 0x503   : > { %s2005_s14 = smov %s1995_s20 }
 0x508   :  { %763 = vsyncpa [#allocation5], 1 }
 0x509   :  { %765 = vsyncpa [#allocation5 + $0x1], 1 }
 0x50a   :  { %766 = vsyncpa [#allocation8], 1 }
 0x50b   :  { %768 = vsyncpa [#allocation8 + $0x1], 1 }
 0x50c   :  { %769 = vsyncpa [#allocation6], 1 }
 0x50d   :  { %771 = vsyncpa [#allocation6 + $0x1], 1 }

</bundles_post_ra>
